<compile_context>
chip_gen: v7x
topology: tpu7x:2x2x1
jax: 0.10.0
libtpu: 0.0.40
codegen_flags: <defaults>
</compile_context>

<pallas_src>
import jax
import jax.numpy as jnp
from jax import lax
from jax.experimental import pallas as pl
from jax.experimental.pallas import tpu as pltpu


def _round_up(x, n):
    return ((x + n - 1) // n) * n


def _vmem_cap_bytes():
    """~75% of physical VMEM (generation aware: ~48 MiB v7x, ~96 MiB v5e/v6e)."""
    try:
        return int(pltpu.get_tpu_info().vmem_capacity_bytes) * 3 // 4
    except Exception:
        return 48 * 1024 * 1024


def _is_v7x():
    try:
        return "v7" in jax.devices()[0].device_kind.lower()
    except Exception:
        return False


def _choose_tiles(m, p_pad, itemsize, vmem_cap, is_v7x):
    """Generation-aware tile selection (VMEM budget, megacore on v7x)."""
    # Sample (reduction) tile: big tiles amortize the ~0.35us/step overhead.
    tm = 2048 if (vmem_cap >= 72 * 1024 * 1024 and m >= 2048) else 1024
    tm = min(tm, _round_up(m, 128))

    # Feature row tile: prefer a single row tile (tp == p_pad) so X is DMA'd once.
    if p_pad <= 512:
        tp = p_pad
    elif p_pad % 512 == 0:
        tp = 512
    elif p_pad % 256 == 0:
        tp = 256
    else:
        tp = 128

    # v7x has 2 TensorCores: make sure the 'parallel' row axis has >= 2 blocks.
    if is_v7x and p_pad >= 256 and (p_pad // tp) < 2:
        tp = p_pad // 2

    def _need(tp_, tm_):
        # double-buffered W/X input tiles + double-buffered f32 output block
        return 2 * (tp_ * tm_ + tm_ * p_pad) * itemsize + 2 * tp_ * p_pad * 4

    while _need(tp, tm) > vmem_cap and tm > 128:
        tm = max(128, (tm // 2) // 128 * 128)
    while _need(tp, tm) > vmem_cap and tp > 128 and p_pad % max(tp // 2, 1) == 0:
        tp //= 2
    return tp, tm


def _group_schedule(Y, k, m, tm, n_tiles):
    """Static-shape grouped-matmul visit schedule over class-sorted samples.

    Returns int32 arrays of length S = n_tiles + k - 1:
      gid[v]   : class gram this visit accumulates into
      tile[v]  : which m-tile of the sorted samples to load
      start[v] : first in-tile row belonging to that class
      end[v]   : one past the last such row (start == end -> fully masked no-op)
    Every class gets >= 1 visit (empty classes a fully masked one), visits for a
    class are consecutive in the grid, and padding visits are fully masked.
    """
    S = n_tiles + k - 1
    counts = jnp.bincount(Y, length=k)                     # samples per class
    ends = jnp.cumsum(counts)
    starts = ends - counts
    first_tile = jnp.clip(starts // tm, 0, n_tiles - 1)
    last_tile = jnp.clip((ends - 1) // tm, 0, n_tiles - 1)
    visits = jnp.where(counts > 0, last_tile - first_tile + 1, 1)
    vend = jnp.cumsum(visits)
    vstart = vend - visits
    total = vend[-1]

    v = jnp.arange(S, dtype=jnp.int32)
    gid = jnp.clip(jnp.searchsorted(vend, v, side="right"), 0, k - 1).astype(jnp.int32)
    tile = jnp.clip(first_tile[gid] + (v - vstart[gid]), 0, n_tiles - 1).astype(jnp.int32)
    ls = jnp.clip(starts[gid] - tile * tm, 0, tm)
    le = jnp.clip(ends[gid] - tile * tm, 0, tm)
    is_pad = v >= total
    ls = jnp.where(is_pad, 0, ls).astype(jnp.int32)
    le = jnp.where(is_pad, 0, le).astype(jnp.int32)
    return gid, tile, ls, le


def _grouped_gram_kernel(gid_ref, tile_ref, start_ref, end_ref,
                         w_ref, x_ref, out_ref):
    """One grid step: accumulate masked W_tile @ X_tile into class gram gid[i].

    gid/tile/start/end: (S,) int32 schedule in SMEM (scalar prefetch)
    w_ref:   (tp, tm)       row tile of W = Xs.T (class-sorted, zero padded)
    x_ref:   (tm, p_pad)    matching sample tile of Xs
    out_ref: (1, tp, p_pad) f32 resident block of the class gram gid[i]
    """
    del tile_ref  # only used by the index_maps
    i = pl.program_id(1)

    g_cur = gid_ref[i]
    g_prev = gid_ref[jnp.maximum(i - 1, 0)]
    is_first = jnp.logical_or(i == 0, g_cur != g_prev)

    @pl.when(is_first)
    def _init():
        out_ref[...] = jnp.zeros_like(out_ref)

    start = start_ref[i]
    end = end_ref[i]
    w = w_ref[...]                                         # (tp, tm)
    col = lax.broadcasted_iota(jnp.int32, w.shape, 1)      # mask the smaller operand
    w = jnp.where((col >= start) & (col < end), w, jnp.zeros_like(w))
    out_ref[0] += jnp.dot(w, x_ref[...], preferred_element_type=jnp.float32)


def _compute_grams(gid, tiles, starts, ends, Wp, Xp, *, k, tp, tm, vmem_limit):
    """Wp: (p_pad, m_pad), Xp: (m_pad, p_pad) -> per-class grams (k, p_pad, p_pad) f32."""
    p_pad, m_pad = Wp.shape
    S = int(gid.shape[0])
    grid = (p_pad // tp, S)

    itemsize = jnp.dtype(Wp.dtype).itemsize
    flops = 2 * p_pad * p_pad * tm * S
    bytes_accessed = (Wp.size + Xp.size) * itemsize + k * p_pad * p_pad * 4

    return pl.pallas_call(
        _grouped_gram_kernel,
        out_shape=jax.ShapeDtypeStruct((k, p_pad, p_pad), jnp.float32),
        grid_spec=pltpu.PrefetchScalarGridSpec(
            num_scalar_prefetch=4,
            grid=grid,
            in_specs=[
                # W row tile: (tp, tm) at (row tile r, m-tile of this visit)
                pl.BlockSpec((tp, tm), lambda r, i, g, t, s, e: (r, t[i])),
                # X sample tile: (tm, p_pad) — same m-tile, full feature width
                pl.BlockSpec((tm, p_pad), lambda r, i, g, t, s, e: (t[i], 0)),
            ],
            # one class gram block per visit; consecutive visits of a class reuse it
            out_specs=pl.BlockSpec((1, tp, p_pad), lambda r, i, g, t, s, e: (g[i], r, 0)),
        ),
        compiler_params=pltpu.CompilerParams(
            dimension_semantics=("parallel", "arbitrary"),
            vmem_limit_bytes=int(vmem_limit),
        ),
        cost_estimate=pl.CostEstimate(
            flops=int(flops), transcendentals=0, bytes_accessed=int(bytes_accessed)),
    )(gid, tiles, starts, ends, Wp, Xp)


def mcr2_forward(X, Y, num_classes, gam1=1.0, gam2=1.0, eps=0.01, use_bf16=True):
    """Mirrors MaximalCodingRateReduction.forward (empirical + theoretical)."""
    X = jnp.asarray(X, jnp.float32)
    Y = jnp.asarray(Y).astype(jnp.int32)       # assumes labels in [0, num_classes)
    m, p = X.shape
    k = int(num_classes)

    comp_dtype = jnp.bfloat16 if use_bf16 else jnp.float32  # bf16 MXU inputs, f32 accumulation
    itemsize = jnp.dtype(comp_dtype).itemsize

    p_pad = max(128, _round_up(p, 128))        # lane-dense output; zero padding is exact
    vmem_cap = _vmem_cap_bytes()
    tp, tm = _choose_tiles(m, p_pad, itemsize, vmem_cap, _is_v7x())
    n_tiles = -(-m // tm)
    m_pad = n_tiles * tm

    # Class-sort the samples so each class gram is a contiguous grouped matmul.
    order = jnp.argsort(Y)
    Xs = X[order]
    gid, tiles, ls, le = _group_schedule(Y, k, m, tm, n_tiles)

    Xp = jnp.zeros((m_pad, p_pad), comp_dtype).at[:m, :p].set(Xs.astype(comp_dtype))
    Wp = Xp.T                                   # transpose once in the wrapper (XLA)

    grams = _compute_grams(gid, tiles, ls, le, Wp, Xp,
                           k=k, tp=tp, tm=tm, vmem_limit=vmem_cap)[:, :p, :p]
    gram_total = jnp.sum(grams, axis=0)        # classes partition the samples -> == W @ W.T

    I = jnp.eye(p, dtype=jnp.float32)

    # TODO(synk): torch.logdet (LU/Cholesky) has no clean Pallas TPU equivalent; using jnp.linalg.slogdet.
    def _logdet(a):
        return jnp.linalg.slogdet(a)[1]

    scalar_d = p / (m * eps)
    discrimn_empi = _logdet(I + gam1 * scalar_d * gram_total) / 2.0
    discrimn_theo = _logdet(I + scalar_d * gram_total) / 2.0

    trPi = jnp.bincount(Y, length=k).astype(jnp.float32) + 1e-8   # trace(Pi_j) + 1e-8
    scalars_c = p / (trPi * eps)
    comp_mats = I[None, :, :] + scalars_c[:, None, None] * grams
    lds = jnp.linalg.slogdet(comp_mats)[1]
    compress_empi = jnp.sum(lds * trPi / m) / 2.0
    compress_theo = jnp.sum(trPi / (2.0 * m) * lds)

    total_loss_empi = gam2 * (-discrimn_empi) + compress_empi
    return (total_loss_empi,
            [discrimn_empi, compress_empi],
            [discrimn_theo, compress_theo])


def _reference(X, Y, k, gam1=1.0, gam2=1.0, eps=0.01):
    """Plain-JAX reference of the PyTorch module."""
    X = jnp.asarray(X, jnp.float32)
    m, p = X.shape
    masks = jax.nn.one_hot(Y, k, dtype=jnp.float32).T        # (k, m)
    grams = jnp.einsum('mp,km,mq->kpq', X, masks, X)          # (k, p, p)
    I = jnp.eye(p, dtype=jnp.float32)
    scalar_d = p / (m * eps)
    d_empi = jnp.linalg.slogdet(I + gam1 * scalar_d * grams.sum(0))[1] / 2.0
    d_theo = jnp.linalg.slogdet(I + scalar_d * grams.sum(0))[1] / 2.0
    trPi = masks.sum(1) + 1e-8
    lds = jnp.linalg.slogdet(I[None] + (p / (trPi * eps))[:, None, None] * grams)[1]
    c_empi = jnp.sum(lds * trPi / m) / 2.0
    c_theo = jnp.sum(trPi / (2.0 * m) * lds)
    total = gam2 * (-d_empi) + c_empi
    return total, d_empi, c_empi, d_theo, c_theo


if __name__ == "__main__":
    key = jax.random.PRNGKey(0)
    kx, ky = jax.random.split(key)

    m, p, num_classes = 64, 32, 4                            # samples, feature dim, classes
    X = jax.random.normal(kx, (m, p), dtype=jnp.float32)
    Y = jax.random.randint(ky, (m,), 0, num_classes, dtype=jnp.int32)

    # --- f32 path: strict check against the f32 reference ---
    tot32, empi32, theo32 = mcr2_forward(X, Y, num_classes, use_bf16=False)
    tot32 = jax.block_until_ready(tot32)
    ref = _reference(X, Y, num_classes)
    assert jnp.isfinite(tot32)
    assert jnp.allclose(empi32[0], ref[1], atol=1e-3, rtol=1e-3)
    assert jnp.allclose(empi32[1], ref[2], atol=1e-3, rtol=1e-3)
    assert jnp.allclose(theo32[0], ref[3], atol=1e-3, rtol=1e-3)
    assert jnp.allclose(theo32[1], ref[4], atol=1e-3, rtol=1e-3)
    assert jnp.allclose(tot32, ref[0], atol=1e-3, rtol=1e-3)

    # --- default path (bf16 MXU inputs, f32 accumulation): check against the
    #     bf16-quantized-input reference (validates kernel math exactly) ---
    tot16, empi16, theo16 = mcr2_forward(X, Y, num_classes)   # use_bf16=True default
    tot16 = jax.block_until_ready(tot16)
    Xq = X.astype(jnp.bfloat16).astype(jnp.float32)
    refq = _reference(Xq, Y, num_classes)
    assert jnp.isfinite(tot16)
    assert jnp.allclose(empi16[0], refq[1], atol=2e-3, rtol=2e-3)
    assert jnp.allclose(empi16[1], refq[2], atol=2e-3, rtol=2e-3)
    assert jnp.allclose(tot16, refq[0], atol=2e-3, rtol=2e-3)

    print("KERNEL_OK")
</pallas_src>

<mosaic_0001>
module attributes {stable_mosaic.version = 11 : i64} {
  func.func @_grouped_gram_kernel(%arg0: i32, %arg1: i32, %arg2: memref<4xi32, #tpu.memory_space<smem>>, %arg3: memref<4xi32, #tpu.memory_space<smem>>, %arg4: memref<4xi32, #tpu.memory_space<smem>>, %arg5: memref<4xi32, #tpu.memory_space<smem>>, %arg6: memref<128x128xf32, #tpu.memory_space<vmem>>, %arg7: memref<128x128xf32, #tpu.memory_space<vmem>>, %arg8: memref<1x128x128xf32, #tpu.memory_space<vmem>>) attributes {dimension_semantics = [#tpu.dimension_semantics<parallel>, #tpu.dimension_semantics<arbitrary>], iteration_bounds = array<i64: 1, 4>, scalar_prefetch = 4 : i64, scratch_operands = 0 : i64, tpu.core_type = #tpu.core_type<tc>, window_params = [{transform_indices = @transform_0, window_bounds = array<i64: 128, 128>}, {transform_indices = @transform_1, window_bounds = array<i64: 128, 128>}, {transform_indices = @transform_2, window_bounds = array<i64: 1, 128, 128>}]} {
    %0 = arith.index_cast %arg1 : i32 to index
    %1 = memref.load %arg2[%0] : memref<4xi32, #tpu.memory_space<smem>>
    %c1_i32 = arith.constant 1 : i32
    %2 = arith.subi %arg1, %c1_i32 : i32
    %c0_i32 = arith.constant 0 : i32
    %3 = arith.maxsi %2, %c0_i32 : i32
    %4 = arith.index_cast %3 : i32 to index
    %5 = memref.load %arg2[%4] : memref<4xi32, #tpu.memory_space<smem>>
    %c0_i32_0 = arith.constant 0 : i32
    %6 = arith.cmpi eq, %arg1, %c0_i32_0 : i32
    %7 = arith.cmpi ne, %1, %5 : i32
    %8 = arith.ori %6, %7 : i1
    %9 = arith.extui %8 : i1 to i32
    %c0_i32_1 = arith.constant 0 : i32
    %10 = arith.cmpi ne, %9, %c0_i32_1 : i32
    scf.if %10 {
      %cst_12 = arith.constant 0.000000e+00 : f32
      %32 = vector.broadcast %cst_12 : f32 to vector<1x128x128xf32>
      %c0_13 = arith.constant 0 : index
      %c0_14 = arith.constant 0 : index
      %c0_15 = arith.constant 0 : index
      %33 = vector.load %arg8[%c0_13, %c0_14, %c0_15] : memref<1x128x128xf32, #tpu.memory_space<vmem>>, vector<1x128x128xf32>
      tpu.vector_store %arg8[%c0_13, %c0_14, %c0_15], %32 {strides = array<i32>} : memref<1x128x128xf32, #tpu.memory_space<vmem>>, vector<1x128x128xf32>,
    } else {
    }
    %11 = arith.index_cast %arg1 : i32 to index
    %12 = memref.load %arg4[%11] : memref<4xi32, #tpu.memory_space<smem>>
    %13 = arith.index_cast %arg1 : i32 to index
    %14 = memref.load %arg5[%13] : memref<4xi32, #tpu.memory_space<smem>>
    %c0 = arith.constant 0 : index
    %c0_2 = arith.constant 0 : index
    %15 = vector.load %arg6[%c0, %c0_2] : memref<128x128xf32, #tpu.memory_space<vmem>>, vector<128x128xf32>
    %16 = tpu.iota {dimensions = array<i32: 1>} : vector<128x128xi32>
    %17 = vector.broadcast %12 : i32 to vector<128x128xi32>
    %18 = arith.cmpi sge, %16, %17 : vector<128x128xi32>
    %19 = vector.broadcast %14 : i32 to vector<128x128xi32>
    %20 = arith.cmpi slt, %16, %19 : vector<128x128xi32>
    %21 = arith.andi %18, %20 : vector<128x128xi1>
    %cst = arith.constant 0.000000e+00 : f32
    %22 = vector.broadcast %cst : f32 to vector<128x128xf32>
    %23 = arith.select %21, %15, %22 : vector<128x128xi1>, vector<128x128xf32>
    %c0_3 = arith.constant 0 : index
    %c0_4 = arith.constant 0 : index
    %c0_5 = arith.constant 0 : index
    %24 = vector.load %arg8[%c0_3, %c0_4, %c0_5] : memref<1x128x128xf32, #tpu.memory_space<vmem>>, vector<1x128x128xf32>
    %25 = vector.shape_cast %24 : vector<1x128x128xf32> to vector<128x128xf32>
    %c0_6 = arith.constant 0 : index
    %c0_7 = arith.constant 0 : index
    %26 = vector.load %arg7[%c0_6, %c0_7] : memref<128x128xf32, #tpu.memory_space<vmem>>, vector<128x128xf32>
    %cst_8 = arith.constant dense<0.000000e+00> : vector<128x128xf32>
    %27 = tpu.matmul %23, %26, %cst_8 {dimension_numbers = #tpu.dot_dimension_numbers<[1], [0], [0], [1], [0, 0, 1, 1], [], []>} : vector<128x128xf32>, vector<128x128xf32>, vector<128x128xf32> -> vector<128x128xf32>
    %28 = arith.addf %25, %27 : vector<128x128xf32>
    %c0_9 = arith.constant 0 : index
    %c0_10 = arith.constant 0 : index
    %c0_11 = arith.constant 0 : index
    %29 = vector.load %arg8[%c0_9, %c0_10, %c0_11] : memref<1x128x128xf32, #tpu.memory_space<vmem>>, vector<1x128x128xf32>
    %30 = vector.shape_cast %29 : vector<1x128x128xf32> to vector<128x128xf32>
    %31 = vector.shape_cast %28 : vector<128x128xf32> to vector<1x128x128xf32>
    tpu.vector_store %arg8[%c0_9, %c0_10, %c0_11], %31 {strides = array<i32>} : memref<1x128x128xf32, #tpu.memory_space<vmem>>, vector<1x128x128xf32>,
    return
  }
  func.func @transform_0(%arg0: i32, %arg1: i32, %arg2: memref<4xi32, #tpu.memory_space<smem>>, %arg3: memref<4xi32, #tpu.memory_space<smem>>, %arg4: memref<4xi32, #tpu.memory_space<smem>>, %arg5: memref<4xi32, #tpu.memory_space<smem>>) -> (i32, i32) {
    %0 = arith.index_cast %arg1 : i32 to index
    %1 = memref.load %arg3[%0] : memref<4xi32, #tpu.memory_space<smem>>
    %c0_i32 = arith.constant 0 : i32
    return %arg0, %1 : i32, i32
  }
  func.func @transform_1(%arg0: i32, %arg1: i32, %arg2: memref<4xi32, #tpu.memory_space<smem>>, %arg3: memref<4xi32, #tpu.memory_space<smem>>, %arg4: memref<4xi32, #tpu.memory_space<smem>>, %arg5: memref<4xi32, #tpu.memory_space<smem>>) -> (i32, i32) {
    %0 = arith.index_cast %arg1 : i32 to index
    %1 = memref.load %arg3[%0] : memref<4xi32, #tpu.memory_space<smem>>
    %c0_i32 = arith.constant 0 : i32
    %c0_i32_0 = arith.constant 0 : i32
    return %1, %c0_i32 : i32, i32
  }
  func.func @transform_2(%arg0: i32, %arg1: i32, %arg2: memref<4xi32, #tpu.memory_space<smem>>, %arg3: memref<4xi32, #tpu.memory_space<smem>>, %arg4: memref<4xi32, #tpu.memory_space<smem>>, %arg5: memref<4xi32, #tpu.memory_space<smem>>) -> (i32, i32, i32) {
    %0 = arith.index_cast %arg1 : i32 to index
    %1 = memref.load %arg2[%0] : memref<4xi32, #tpu.memory_space<smem>>
    %c0_i32 = arith.constant 0 : i32
    %c0_i32_0 = arith.constant 0 : i32
    return %1, %arg0, %c0_i32 : i32, i32, i32
  }
}

</mosaic_0001>

<bundles_post_ra>
// kernel: tpu_custom_call.1
= control target key start
LH: loop header
LB: loop body
LE: loop exit
PB: predicated region body
PF: predicated region fallthrough
CT: control target
= control target key end

     0   :  { %s1743_s0 = inlined_call_operand.hbm [shape: s32[4], index: 0, kind: input, shape index: {}]   ;;  %s1744_s4 = inlined_call_operand.hbm [shape: f32[128,128], index: 4, kind: input, shape index: {}]   ;;  %s1745_s5 = inlined_call_operand.hbm [shape: f32[128,128], index: 5, kind: input, shape index: {}]   ;;  %s1746_s6 = inlined_call_operand.hbm [shape: f32[4,128,128], index: 6, kind: output, shape index: {}]   ;;  %s1747_s1 = inlined_call_operand.vmem [shape: s32[4], index: 1, kind: input, shape index: {}]   ;;  %s1748_s2 = inlined_call_operand.vmem [shape: s32[4], index: 2, kind: input, shape index: {}]   ;;  %s1749_s3 = inlined_call_operand.vmem [shape: s32[4], index: 3, kind: input, shape index: {}]  }
   0x1   :  { %1758 = sst [smem:[#allocation27_spill]] %s1744_s4  ;;  %s963_s23 = scalar_lea.hbm %s1743_s0, 16 }
   0x2   :  { %p964_p0 = scmp.ne.s32.totalorder %s1743_s0, %s963_s23  ;;  %p967_p1 = scmp.lt.u32.totalorder %s963_s23, %s1743_s0 }
   0x4   :  { %p969_p2 = pnand %p967_p1, %p964_p0 }
   0x6   :  { %972 = shalt.err (!%p969_p2)  }
   0x7   :  { %s1207_s28 = smov [#allocation3]   ;;  %s13_s9 = sshll.u32 %s1747_s1, 4  ;;  %s14_s9 = int_to_ptr.vmem [resolvable:$true] %s13_s9 }
   0x8   :  { %12 = dma.hbm_to_smem %s1743_s0, 16, %s1207_s28, [#allocation2] }
   0x9   :  { %s17_s12 = sshll.u32 %s1748_s2, 4  ;;  %s973_s13 = scalar_lea.vmem %s14_s9, 16  ;;  %s18_s12 = int_to_ptr.vmem [resolvable:$true] %s17_s12 }
   0xa   :  { %p974_p3 = scmp.ne.s32.totalorder %s14_s9, %s973_s13  ;;  %p978_p4 = scmp.lt.s32.totalorder %s14_s9, %s14_s9 }
   0xb   :  { %p979_p5 = scmp.lt.s32.totalorder %s973_s13, %s973_s13 }
   0xd   :  { %p980_p6 = por %p979_p5, %p978_p4 }
   0xf   :  { %p981_p7 = pnand %p980_p6, %p974_p3 }
  0x11   :  { %984 = shalt.err (!%p981_p7)  }
  0x12   :  { %s1208_s14 = smov [#allocation4]   ;;  %s21_s16 = sshll.u32 %s1749_s3, 4  ;;  %s22_s16 = int_to_ptr.vmem [resolvable:$true] %s21_s16 }
  0x13   :  { %16 = dma.vmem_to_smem %s14_s9, 16, %s1208_s14, [#allocation2] }
  0x14   :  { %s985_s1 = scalar_lea.vmem %s18_s12, 16  ;;  %p990_p9 = scmp.lt.s32.totalorder %s18_s12, %s18_s12 }
  0x15   :  { %p986_p8 = scmp.ne.s32.totalorder %s18_s12, %s985_s1  ;;  %p991_p10 = scmp.lt.s32.totalorder %s985_s1, %s985_s1 }
  0x17   :  { %p992_p11 = por %p991_p10, %p990_p9 }
  0x19   :  { %p993_p12 = pnand %p992_p11, %p986_p8 }
  0x1b   :  { %996 = shalt.err (!%p993_p12)  }
  0x1c   :  { %s1209_s2 = smov [#allocation5]   ;;  %s997_s17 = scalar_lea.vmem %s22_s16, 16 }
  0x1d   :  { %20 = dma.vmem_to_smem %s18_s12, 16, %s1209_s2, [#allocation2] }
  0x1e   :  { %p998_p13 = scmp.ne.s32.totalorder %s22_s16, %s997_s17  ;;  %p1002_p0 = scmp.lt.s32.totalorder %s22_s16, %s22_s16 }
  0x1f   :  { %p1003_p1 = scmp.lt.s32.totalorder %s997_s17, %s997_s17 }
  0x21   :  { %p1004_p2 = por %p1003_p1, %p1002_p0 }
  0x23   :  { %p1005_p3 = pnand %p1004_p2, %p998_p13 }
  0x25   :  { %1008 = shalt.err (!%p1005_p3)  }
  0x26   :  { %s1210_s18 = smov [#allocation6]  }
  0x27   :  { %24 = dma.vmem_to_smem %s22_s16, 16, %s1210_s18, [#allocation2] }
  0x28   :  { %1145 = dma.done.wait [#allocation2], 64 }
  0x29   :  { %1146 = vsyncadd [#allocation2], 4294967232 }
  0x2a   :  { %26 = sfence }
  0x2b   :  { %27 = vsyncpa [#allocation8], 0 }
  0x2c   :  { %29 = vsyncpa [#allocation8 + $0x1], 0 }
  0x2d   :  { %30 = vsyncpa [#allocation11], 0 }
  0x2e   :  { %32 = vsyncpa [#allocation11 + $0x1], 0 }
  0x2f   :  { %33 = vsyncpa [#allocation9], 0 }
  0x30   :  { %35 = vsyncpa [#allocation9 + $0x1], 0  ;;  %s1275_s3 = smov 0   ;;  %s1277_s19 = smov 0  }
  0x31   :  { %s1279_s20 = smov 0   ;;  %s1281_s21 = smov 0  }
  0x32   :  { %s1283_s22 = smov 0   ;;  %s1285_s23 = smov 0  }
  0x33   :  { %s1287_s24 = smov 0   ;;  %s1289_s25 = smov 0  }
  0x34   :  { %s1291_s26 = smov 0   ;;  %s1293_s27 = smov 0  }
  0x35   :  { %s1295_s28 = smov 0   ;;  %s1297_s29 = smov 0  }
  0x36 LB: > { %1759 = sst [smem:[#allocation22_spill]] %s1169_s20  ;;  %s656_s30 = sadd.s32 4294967295, %s1205_s29   ;;  %s1205_s29 = sphi %s1297_s29, %s41_s29   ;;  %s1201_s28 = sphi %s1295_s28, %s1798_s28   ;;  %s1197_s27 = sphi %s1293_s27, %s1797_s27   ;;  %s1193_s26 = sphi %s1291_s26, %s1788_s26   ;;  %s1189_s25 = sphi %s1289_s25, %s1796_s25   ;;  %s1185_s24 = sphi %s1287_s24, %s1795_s24   ;;  %s1181_s23 = sphi %s1285_s23, %s1794_s23   ;;  %s1177_s22 = sphi %s1283_s22, %s1793_s22   ;;  %s1173_s21 = sphi %s1281_s21, %s1792_s21   ;;  %s1169_s20 = sphi %s1279_s20, %s1786_s20   ;;  %s1165_s19 = sphi %s1277_s19, %s1791_s19   ;;  %s1161_s3 = sphi %s1275_s3, %s1790_s3  }
  0x37   : > { %1760 = sst [smem:[#allocation23_spill]] %s1193_s26  ;;  %s657_s7 = sadd.s32 4294967294, %s1205_s29  }
  0x38   : > { %s50_s8 = sadd.s32 1, %s1201_s28  ;;  %s57_s9 = sld [smem:[#allocation4 + %s1201_s28]] }
  0x39   : > { %p51_p4 = scmp.ge.s32.totalorder %s50_s8, 4  ;;  %s64_s10 = sadd.s32 1, %s1193_s26 }
  0x3a   : > { %p71_p5 = scmp.ne.s32.totalorder %s1193_s26, %s1189_s25  ;;  %p1753_p6 = scmp.eq.s32.totalorder %s1205_s29, 0 }
  0x3b   : > { %s1800_s8 = smov (%p51_p4, %s50_s8), 0  ;;  %p77_p8 = scmp.ne.s32.totalorder %s1189_s25, %s1185_s24 }
  0x3c   : > { %1761 = sst [smem:[#allocation24_spill]] %s1800_s8  ;;  %p1345_p7 = por %p1753_p6, %p71_p5 }
  0x3d   : > { %s58_s12 = sld [smem:[#allocation4 + %s1800_s8]]  ;;  %p1351_p9 = scmp.eq.s32.totalorder %s656_s30, 0 }
  0x3e   : > { %s115_s14 = sld [smem:[#allocation3 + %s1201_s28]]  ;;  %s122_s16 = sadd.s32 1, %s1169_s20 }
  0x3f   : > { %s116_s0 = sld [smem:[#allocation3 + %s1800_s8]]  ;;  %p1359_p10 = por %p1351_p9, %p77_p8 }
  0x40   : > { %p132_p11 = scmp.ne.s32.totalorder %s1169_s20, %s1165_s19  ;;  %p133_p12 = scmp.eq.s32.totalorder %s656_s30, 3 }
  0x41   : > { %s1764_s15 = scalar_select %p1359_p10, 1, 0 }
  0x42   : > { %p138_p13 = scmp.ne.s32.totalorder %s1165_s19, %s1161_s3  ;;  %p139_p0 = scmp.eq.s32.totalorder %s657_s7, 3 }
  0x43   : > { %p1368_p1 = por %p133_p12, %p132_p11  ;;  %s60_s2 = ssub.s32 %s57_s9, %s58_s12 }
  0x44   : > { %p1372_p2 = por %p139_p0, %p138_p13  ;;  %p62_p3 = scmp.eq.s32.totalorder %s60_s2, 0 }
  0x45   : > { %s1765_s1 = scalar_select %p1368_p1, 1, 0 }
  0x46   : > { %s1766_s17 = scalar_select %p1372_p2, 1, 0 }
  0x47   : > { %s117_s18 = ssub.s32 %s115_s14, %s116_s0  ;;  %p1752_p5 = scmp.lt.s32.totalorder %s1205_s29, 4 }
  0x48   : > { %p120_p4 = scmp.eq.s32.totalorder %s117_s18, 0  ;;  %s159_s7 = sand.u32 1, %s1193_s26  }
  0x49   : > { %s1378_s24 = scalar_select %p62_p3, %s1193_s26, %s64_s10  }
  0x4a   : > { %s1381_s30 = scalar_select %p120_p4, %s1169_s20, %s122_s16  }
  0x4b   : > { %1767 = sst [smem:[#allocation25_spill]] %s1378_s24  ;;  %p1388_p8 = pnand %p1752_p5, %p1345_p7 }
  0x4c   : > { %1768 = sst [smem:[#allocation26_spill]] %s1381_s30  ;;  %s660_s12 = sshll.u32 %s159_s7, 7 }
  0x4d   : > { %s829_s14 = scalar_select %p1345_p7, [#allocation4], [#allocation13] }
  0x4e   : > { %s830_s0 = scalar_select %p1345_p7, %s1201_s28, 0 }
  0x4f   : > { %s1802_s14 = smov (!%p1752_p5, %s829_s14), [#allocation16]  ;;  %s163_s10 = scalar_lea.vmem [#allocation7], %s660_s12 }
  0x50   : > { %s1804_s0 = smov (!%p1752_p5, %s830_s0), 0  ;;  %s172_s16 = sshll.u32 %s163_s10, 4  ;;  %s1401_s16 = int_to_ptr.vmem [resolvable:$true] %s172_s16 }
  0x51   : > { %s164_s2 = sld [smem:[%s1802_s14 + %s1804_s0]]  ;;  %p665_p11 = scmp.ge.s32.totalorder %s1205_s29, 1 }
  0x52   : > { %p202_p12 = scmp.lt.s32.totalorder %s1205_s29, 5  ;;  %s1410_s11 = sld [smem:[#allocation4 + %s1201_s28]] }
  0x53   : > { %s1771_s4 = sld [smem:[#allocation27_spill]]  ;;  %s1420_s14 = scalar_lea.sflag [#allocation8], %s159_s7 }
  0x54   : > { %p1405_p13 = pnand %p665_p11, %p202_p12  ;;  %s1418_s12 = sld [smem:[#allocation4 + %s1800_s8]] }
  0x55   : > { %p1011_p0 = pneg %p1388_p8 }
  0x56   : > { %s1770_s18 = scalar_select %p1405_p13, 1, 0 }
  0x57   : > { %s661_s24 = sshll.u32 %s164_s2, 7 }
  0x59   : > { %s1415_s20 = scalar_lea.hbm %s1771_s4, %s661_s24  ;;  %s1014_s24 = scalar_lea.hbm %s1771_s4, 2048 }
  0x5a   : > { %s1009_s0 = scalar_lea.hbm %s1415_s20, 2048  ;;  %p1015_p11 = scmp.lt.u32.totalorder %s1415_s20, %s1771_s4 }
  0x5b   : > { %p1010_p7 = scmp.ne.s32.totalorder %s1415_s20, %s1009_s0  ;;  %p1016_p12 = scmp.lt.u32.totalorder %s1014_s24, %s1009_s0 }
  0x5c   : > { %p1018_p6 = scmp.lt.u32.totalorder %s1009_s0, %s1415_s20 }
  0x5d   : > { %p1012_p3 = pnand %p1011_p0, %p1010_p7  ;;  %p1017_p5 = por %p1016_p12, %p1015_p11 }
  0x5f   : > { %p1013_p4 = pneg %p1012_p3  ;;  %p1019_p2 = por %p1018_p6, %p1017_p5 }
  0x61   : > { %p1020_p1 = pnand %p1019_p2, %p1013_p4 }
  0x63   : > { %1023 = shalt.err (!%p1020_p1)
}
  0x64   : > { %s1024_s7 = scalar_lea.vmem %s1401_s16, 2048  ;;  %s1211_s10 = smov [#allocation7]  }
  0x65   : > { %p1025_p7 = scmp.ne.s32.totalorder %s1401_s16, %s1024_s7  ;;  %s1029_s26 = sshll.u32 %s1211_s10, 4  ;;  %s1030_s26 = int_to_ptr.vmem [resolvable:$false] %s1029_s26 }
  0x66   : > { %s1031_s30 = scalar_lea.vmem %s1030_s26, 4096  ;;  %p1032_p13 = scmp.lt.s32.totalorder %s1401_s16, %s1030_s26 }
  0x67   : > { %p1027_p3 = pnand %p1025_p7, %p1011_p0  ;;  %p1033_p11 = scmp.lt.s32.totalorder %s1031_s30, %s1024_s7 }
  0x69   : > { %p1028_p10 = pneg %p1027_p3  ;;  %p1034_p12 = por %p1033_p11, %p1032_p13 }
  0x6b   : > { %p1035_p6 = pnand %p1034_p12, %p1028_p10 }
  0x6d   : > { %1038 = shalt.err (!%p1035_p6)
}
  0x6e   : > { %s1757_s0 = smov 128   ;;  %s1213_s24 = smov 8  }
  0x6f   : > { %846 = dma.hbm_to_vmem [thread:$0]  (!%p1388_p8), %s1415_s20, 2048, %s1401_s16, %s1420_s14, %s1757_s0, %s1757_s0, %s1213_s24  }
  0x70   : > { %p99_p10 = scmp.ne.s32.totalorder %s1181_s23, %s1177_s22  ;;  %p105_p1 = scmp.ne.s32.totalorder %s1177_s22, %s1173_s21 }
  0x71   : > { %p1772_p2 = scmp.eq.s32.totalorder %s1205_s29, 0  ;;  %s182_s2 = sand.u32 1, %s1181_s23  }
  0x72   : > { %p1460_p13 = por %p105_p1, %p1351_p9  ;;  %s89_s10 = ssub.s32 %s1410_s11, %s1418_s12 }
  0x73   : > { %p101_p5 = por %p99_p10, %p1772_p2  ;;  %s92_s26 = sadd.s32 1, %s1181_s23 }
  0x74   : > { %p90_p0 = scmp.eq.s32.totalorder %s89_s10, 0  ;;  %s662_s30 = sshll.u32 %s182_s2, 7 }
  0x75   : > { %s832_s9 = scalar_select %p101_p5, [#allocation4], [#allocation14] }
  0x76   : > { %s1468_s4 = scalar_select %p90_p0, %s1181_s23, %s92_s26  }
  0x77   : > { %s833_s8 = scalar_select %p101_p5, %s1201_s28, 0 }
  0x78   : > { %p1774_p4 = scmp.lt.s32.totalorder %s1205_s29, 4  ;;  %s186_s13 = scalar_lea.vmem [#allocation10], %s662_s30 }
  0x79   : > { %s194_s16 = sshll.u32 %s186_s13, 4  ;;  %s1488_s26 = scalar_lea.sflag [#allocation11], %s182_s2  ;;  %s1481_s16 = int_to_ptr.vmem [resolvable:$true] %s194_s16 }
  0x7a   : > { %s1806_s9 = smov (!%p1774_p4, %s832_s9), [#allocation17]  ;;  %p1775_p8 = pmov %p1774_p4 }
  0x7b   : > { %p1776_p7 = pmov %p1774_p4 }
  0x7c   : > { %s1808_s8 = smov (!%p1775_p8, %s833_s8), 0 }
  0x7d   : > { %p1477_p3 = pnand %p1776_p7, %p101_p5  ;;  %s187_s21 = sld [smem:[%s1806_s9 + %s1808_s8]] }
  0x7e   : > { %s1044_s9 = scalar_lea.hbm %s1745_s5, 2048 }
  0x7f   : > { %p1041_p11 = pneg %p1477_p3 }
  0x83   : > { %s691_s11 = sshll.u32 %s187_s21, 11 }
  0x84   : > { %s1486_s10 = scalar_lea.hbm %s1745_s5, %s691_s11 }
  0x85   : > { %s1039_s0 = scalar_lea.hbm %s1486_s10, 2048  ;;  %p1045_p10 = scmp.lt.u32.totalorder %s1486_s10, %s1745_s5 }
  0x86   : > { %p1040_p9 = scmp.ne.s32.totalorder %s1486_s10, %s1039_s0  ;;  %p1046_p1 = scmp.lt.u32.totalorder %s1044_s9, %s1039_s0 }
  0x87   : > { %p1048_p5 = scmp.lt.u32.totalorder %s1039_s0, %s1486_s10 }
  0x88   : > { %p1042_p12 = pnand %p1041_p11, %p1040_p9  ;;  %p1047_p2 = por %p1046_p1, %p1045_p10 }
  0x8a   : > { %p1043_p6 = pneg %p1042_p12  ;;  %p1049_p0 = por %p1048_p5, %p1047_p2 }
  0x8c   : > { %p1050_p4 = pnand %p1049_p0, %p1043_p6 }
  0x8e   : > { %1053 = shalt.err (!%p1050_p4)
}
  0x8f   : > { %s1054_s2 = scalar_lea.vmem %s1481_s16, 2048  ;;  %s1214_s11 = smov [#allocation10]  }
  0x90   : > { %p1055_p8 = scmp.ne.s32.totalorder %s1481_s16, %s1054_s2  ;;  %s1059_s12 = sshll.u32 %s1214_s11, 4  ;;  %s1060_s12 = int_to_ptr.vmem [resolvable:$false] %s1059_s12 }
  0x91   : > { %s1061_s14 = scalar_lea.vmem %s1060_s12, 4096  ;;  %p1062_p12 = scmp.lt.s32.totalorder %s1481_s16, %s1060_s12 }
  0x92   : > { %p1057_p7 = pnand %p1055_p8, %p1041_p11  ;;  %p1063_p10 = scmp.lt.s32.totalorder %s1061_s14, %s1054_s2 }
  0x94   : > { %p1058_p9 = pneg %p1057_p7  ;;  %p1064_p1 = por %p1063_p10, %p1062_p12 }
  0x96   : > { %p1065_p2 = pnand %p1064_p1, %p1058_p9 }
  0x98   : > { %1068 = shalt.err (!%p1065_p2)
}
  0x99   : > { %s1778_s0 = smov 128   ;;  %p1779_p11 = scmp.ne.s32.totalorder %s1770_s18, 0 }
  0x9a   : > { %851 = dma.hbm_to_vmem [thread:$0]  (!%p1477_p3), %s1486_s10, 2048, %s1481_s16, %s1488_s26, %s1778_s0, %s1778_s0, %s1213_s24  }
  0x9b   : > { %206 = sbr.rel (%p1779_p11) target bundleno = 466 (0x1d2), region = 28  ;;  %s208_s8 = sand.u32 (!%p1779_p11), 1, %s1189_s25  }
  0x9c   : > { %s666_s30 = sshll.u32 (!%p1779_p11), %s208_s8, 7  ;;  %s209_s9 = scalar_lea.sflag (!%p1779_p11), [#allocation8], %s208_s8 }
  0x9d   : > { %s1522_s21 = scalar_lea.vmem (!%p1779_p11), [#allocation7], %s666_s30  ;;  %p1780_p6 = scmp.ne.s32.totalorder (!%p1779_p11), %s1764_s15, 0 }
  0xa2   : > { %1148 = dma.done.wait (%p1780_p6), %s209_s9, 2048  }
  0xa3   : > { %1150 = vsyncadd (%p1780_p6), %s209_s9, 4294965248  ;;  %s217_s20 = sand.u32 1, %s1177_s22  }
  0xa4   : > { %s667_s13 = sshll.u32 %s217_s20, 7  ;;  %s218_s24 = scalar_lea.sflag [#allocation11], %s217_s20 }
  0xa5   : > { %s1529_s16 = scalar_lea.vmem [#allocation10], %s667_s13 }
  0xa6   : > { %1152 = dma.done.wait (%p1460_p13), %s218_s24, 2048  }
  0xa7   : > { %1154 = vsyncadd (%p1460_p13), %s218_s24, 4294965248  ;;  %s669_s18 = sadd.s32 4294967295, %s1197_s27  ;;  %s253_s15 = sld [smem:[#allocation3 + %s1197_s27]] }
  0xa8   : > { %p255_p3 = scmp.gt.s32.totalorder %s669_s18, 0  ;;  %s244_s10 = sand.u32 1, %s1165_s19  }
  0xa9   : > { %s668_s26 = sshll.u32 %s244_s10, 7  ;;  %p258_p5 = scmp.eq.s32.totalorder %s1197_s27, 0 }
  0xaa   : > { %s1810_s18 = smov (!%p255_p3, %s669_s18), 0  ;;  %s1541_s11 = scalar_lea.vmem [#allocation12], %s668_s26 }
  0xab   : > { %s257_s2 = sld [smem:[#allocation3 + %s1810_s18]] }
  0xb1   : > { %p259_p0 = scmp.ne.s32.totalorder %s253_s15, %s257_s2 }
  0xb3   : > { %p260_p4 = por %p259_p0, %p258_p5 }
  0xb4   : > { %v1215_v0 = vmov (%p260_p4), 0.0  }
  0xb5   : > { %263 = sbr.rel (!%p260_p4) target bundleno = 189 (0xbd), region = 40  ;;  %264 = vst [vmem:[%s1541_s11] sm:$0xff] (%p260_p4), %v1215_v0  ;;  %265 = vst [vmem:[%s1541_s11 + $0x8] sm:$0xff] (%p260_p4), %v1215_v0 }
  0xb6   : > { %266 = vst [vmem:[%s1541_s11 + $0x10] sm:$0xff] (%p260_p4), %v1215_v0  ;;  %267 = vst [vmem:[%s1541_s11 + $0x18] sm:$0xff] (%p260_p4), %v1215_v0 }
  0xb7   : > { %268 = vst [vmem:[%s1541_s11 + $0x20] sm:$0xff] (%p260_p4), %v1215_v0  ;;  %269 = vst [vmem:[%s1541_s11 + $0x28] sm:$0xff] (%p260_p4), %v1215_v0 }
  0xb8   : > { %270 = vst [vmem:[%s1541_s11 + $0x30] sm:$0xff] (%p260_p4), %v1215_v0  ;;  %271 = vst [vmem:[%s1541_s11 + $0x38] sm:$0xff] (%p260_p4), %v1215_v0 }
  0xb9   : > { %272 = vst [vmem:[%s1541_s11 + $0x40] sm:$0xff] (%p260_p4), %v1215_v0  ;;  %273 = vst [vmem:[%s1541_s11 + $0x48] sm:$0xff] (%p260_p4), %v1215_v0 }
  0xba   : > { %274 = vst [vmem:[%s1541_s11 + $0x50] sm:$0xff] (%p260_p4), %v1215_v0  ;;  %275 = vst [vmem:[%s1541_s11 + $0x58] sm:$0xff] (%p260_p4), %v1215_v0 }
  0xbb   : > { %276 = vst [vmem:[%s1541_s11 + $0x60] sm:$0xff] (%p260_p4), %v1215_v0  ;;  %277 = vst [vmem:[%s1541_s11 + $0x68] sm:$0xff] (%p260_p4), %v1215_v0 }
  0xbc   : > { %278 = vst [vmem:[%s1541_s11 + $0x70] sm:$0xff] %v1215_v0  ;;  %279 = vst [vmem:[%s1541_s11 + $0x78] sm:$0xff] %v1215_v0 }
  0xbd PF: > { %v337_v1 = vld [vmem:[%s1529_s16] sm:$0xff]  ;;  %v338_v2 = vld [vmem:[%s1529_s16 + $0x8] sm:$0xff]  ;;  %v339_v3 = vld [vmem:[%s1529_s16 + $0x10] sm:$0xff]  ;;  %s280_s7 = sld [smem:[#allocation5 + %s1197_s27]]  ;;  %v298_v4 = vlaneseq  ;;  %p1783_p13 = scmp.ne.s32.totalorder %s1765_s1, 0 }
  0xbe   : > { %s281_s12 = sld [smem:[#allocation6 + %s1197_s27]]  ;;  %v781_v5 = vpack.c.bf16 %v338_v2, %v337_v1  ;;  %v340_v6 = vld [vmem:[%s1529_s16 + $0x18] sm:$0xff]  ;;  %v341_v8 = vld [vmem:[%s1529_s16 + $0x20] sm:$0xff]  ;;  %v342_v9 = vld [vmem:[%s1529_s16 + $0x28] sm:$0xff]  ;;  %s547_s8 = sshll.u32 %s1541_s11, 4  ;;  %s1671_s8 = int_to_ptr.vmem [resolvable:$true] %s547_s8 }
  0xbf   : > { %v785_v7 = vpack.c.bf16 %v340_v6, %v339_v3  ;;  %v299_v10 = vand.u32 127, %v298_v4  ;;  %v789_v11 = vpack.c.bf16 %v342_v9, %v341_v8  ;;  %v343_v12 = vld [vmem:[%s1529_s16 + $0x30] sm:$0xff]  ;;  %v344_v13 = vld [vmem:[%s1529_s16 + $0x38] sm:$0xff]  ;;  %v282_v16 = vld [vmem:[%s1522_s21] sm:$0xff]  ;;  %s837_s14 = scalar_select %p1783_p13, [#allocation3], [#allocation15] }
  0xc0   : > { %782 = vmatprep.subr.bf16.mxu0 %v781_v5  ;;  %813 = vmatprep.subr.bf16.mxu1 %v781_v5  ;;  %v290_v17 = vld [vmem:[%s1522_s21 + $0x40] sm:$0xff]  ;;  %v793_v19 = vpack.c.bf16 %v344_v13, %v343_v12  ;;  %v346_v21 = vld [vmem:[%s1529_s16 + $0x48] sm:$0xff]  ;;  %v347_v23 = vld [vmem:[%s1529_s16 + $0x50] sm:$0xff]  ;;  %s1812_s27 = smov (!%p1783_p13, %s1197_s27), 0  ;;  %s1679_s20 = scalar_lea.sflag [#allocation9], %s244_s10 }
  0xc1   : > { %784 = vmatpush3.bf16.msra.mxu0 %v781_v5  ;;  %821 = vmatpush3.bf16.msra.mxu1 %v781_v5  ;;  %v345_v20 = vld [vmem:[%s1529_s16 + $0x40] sm:$0xff]  ;;  %v348_v24 = vld [vmem:[%s1529_s16 + $0x58] sm:$0xff]  ;;  %v350_v27 = vld [vmem:[%s1529_s16 + $0x68] sm:$0xff]  ;;  %s1640_s0 = sld [smem:[%s837_s14 + %s1812_s27]]  ;;  %s1069_s13 = scalar_lea.vmem %s1671_s8, 2048 }
  0xc2   : > { %786 = vmatprep.subr.bf16.mxu0 %v785_v7  ;;  %814 = vmatprep.subr.bf16.mxu1 %v785_v7  ;;  %v797_v22 = vpack.c.bf16 %v346_v21, %v345_v20  ;;  %v801_v25 = vpack.c.bf16 %v348_v24, %v347_v23  ;;  %v349_v26 = vld [vmem:[%s1529_s16 + $0x60] sm:$0xff]  ;;  %v351_v29 = vld [vmem:[%s1529_s16 + $0x70] sm:$0xff]  ;;  %v352_v30 = vld [vmem:[%s1529_s16 + $0x78] sm:$0xff]  ;;  %p1070_p8 = scmp.ne.s32.totalorder %s1671_s8, %s1069_s13  ;;  %s1216_s24 = smov [#allocation12]  }
  0xc3   : > { %v300_v14 = vstv %s280_s7  ;;  %v805_v28 = vpack.c.bf16 %v350_v27, %v349_v26  ;;  %v809_v31 = vpack.c.bf16 %v352_v30, %v351_v29  ;;  %v283_v32 = vld [vmem:[%s1522_s21 + $0x8] sm:$0xff]  ;;  %v284_v34 = vld [vmem:[%s1522_s21 + $0x10] sm:$0xff]  ;;  %v285_v36 = vld [vmem:[%s1522_s21 + $0x18] sm:$0xff]  ;;  %s1073_s16 = sshll.u32 %s1216_s24, 4  ;;  %s1074_s16 = int_to_ptr.vmem [resolvable:$false] %s1073_s16 }
  0xc4   : > { %v302_v15 = vstv %s281_s12  ;;  %vm301_vm0 = vcmp.ge.s32.totalorder %v299_v10, %v300_v14  ;;  %v291_v33 = vld [vmem:[%s1522_s21 + $0x48] sm:$0xff]  ;;  %v292_v35 = vld [vmem:[%s1522_s21 + $0x50] sm:$0xff]  ;;  %v293_v37 = vld [vmem:[%s1522_s21 + $0x58] sm:$0xff]  ;;  %p1071_p7 = pnand %p1070_p8, %p1783_p13  ;;  %s1075_s18 = scalar_lea.vmem %s1074_s16, 4096 }
  0xc5   : > { %vm303_vm1 = vcmp.lt.s32.totalorder %v299_v10, %v302_v15  ;;  %788 = vmatpush3.bf16.msra.mxu0 %v785_v7  ;;  %822 = vmatpush3.bf16.msra.mxu1 %v785_v7  ;;  %v286_v38 = vld [vmem:[%s1522_s21 + $0x20] sm:$0xff]  ;;  %v287_v40 = vld [vmem:[%s1522_s21 + $0x28] sm:$0xff]  ;;  %v288_v42 = vld [vmem:[%s1522_s21 + $0x30] sm:$0xff]  ;;  %p1076_p12 = scmp.lt.s32.totalorder %s1671_s8, %s1074_s16  ;;  %p1077_p10 = scmp.lt.s32.totalorder %s1075_s18, %s1069_s13 }
  0xc6   : > { %vm1571_vm2 = vmand %vm301_vm0, %vm303_vm1  ;;  %790 = vmatprep.subr.bf16.mxu0 %v789_v11  ;;  %815 = vmatprep.subr.bf16.mxu1 %v789_v11  ;;  %v294_v39 = vld [vmem:[%s1522_s21 + $0x60] sm:$0xff]  ;;  %v295_v41 = vld [vmem:[%s1522_s21 + $0x68] sm:$0xff]  ;;  %p1072_p9 = pneg %p1071_p7 }
  0xc7   : > { %757 = vmatprep.mubr.msk.f32.mxu0 %vm1571_vm2, %v282_v16  ;;  %769 = vmatprep.mubr.msk.f32.mxu1 %vm1571_vm2, %v290_v17  ;;  %v296_v43 = vld [vmem:[%s1522_s21 + $0x70] sm:$0xff]  ;;  %v289_v44 = vld [vmem:[%s1522_s21 + $0x38] sm:$0xff]  ;;  %v322_v46 = vld [vmem:[%s1541_s11 + $0x8] sm:$0xff]  ;;  %s692_s27 = sshll.u32 %s1640_s0, 11  ;;  %p1078_p1 = por %p1077_p10, %p1076_p12 }
  0xc8   : > { %v297_v45 = vld [vmem:[%s1522_s21 + $0x78] sm:$0xff]  ;;  %v330_v47 = vld [vmem:[%s1541_s11 + $0x48] sm:$0xff]  ;;  %v321_v48 = vld [vmem:[%s1541_s11] sm:$0xff]  ;;  %s1669_s21 = scalar_lea.hbm %s1746_s6, %s692_s27 }
  0xc9   : > { %792 = vmatpush3.bf16.msra.mxu0 %v789_v11  ;;  %823 = vmatpush3.bf16.msra.mxu1 %v789_v11  ;;  %v329_v49 = vld [vmem:[%s1541_s11 + $0x40] sm:$0xff]  ;;  %v324_v58 = vld [vmem:[%s1541_s11 + $0x18] sm:$0xff]  ;;  %v323_v60 = vld [vmem:[%s1541_s11 + $0x10] sm:$0xff]  ;;  %p1079_p2 = pnand %p1078_p1, %p1072_p9 }
  0xca   : > { %794 = vmatprep.subr.bf16.mxu0 %v793_v19  ;;  %816 = vmatprep.subr.bf16.mxu1 %v793_v19  ;;  %v332_v59 = vld [vmem:[%s1541_s11 + $0x58] sm:$0xff]  ;;  %v331_v61 = vld [vmem:[%s1541_s11 + $0x50] sm:$0xff]  ;;  %v326_v6 = vld [vmem:[%s1541_s11 + $0x28] sm:$0xff] }
  0xcb   : > { %v334_v7 = vld [vmem:[%s1541_s11 + $0x68] sm:$0xff]  ;;  %v325_v8 = vld [vmem:[%s1541_s11 + $0x20] sm:$0xff]  ;;  %v328_v18 = vld [vmem:[%s1541_s11 + $0x38] sm:$0xff] }
  0xcc   : > { %v333_v9 = vld [vmem:[%s1541_s11 + $0x60] sm:$0xff]  ;;  %v327_v20 = vld [vmem:[%s1541_s11 + $0x30] sm:$0xff] }
  0xcd   : > { %796 = vmatpush3.bf16.msra.mxu0 %v793_v19  ;;  %824 = vmatpush3.bf16.msra.mxu1 %v793_v19  ;;  %v336_v19 = vld [vmem:[%s1541_s11 + $0x78] sm:$0xff]  ;;  %v335_v21 = vld [vmem:[%s1541_s11 + $0x70] sm:$0xff] }
  0xce   : > { %798 = vmatprep.subr.bf16.mxu0 %v797_v22  ;;  %817 = vmatprep.subr.bf16.mxu1 %v797_v22 }
  0xd1   : > { %800 = vmatpush3.bf16.msra.mxu0 %v797_v22  ;;  %825 = vmatpush3.bf16.msra.mxu1 %v797_v22 }
  0xd2   : > { %802 = vmatprep.subr.bf16.mxu0 %v801_v25  ;;  %818 = vmatprep.subr.bf16.mxu1 %v801_v25 }
  0xd5   : > { %804 = vmatpush3.bf16.msra.mxu0 %v801_v25  ;;  %826 = vmatpush3.bf16.msra.mxu1 %v801_v25 }
  0xd6   : > { %806 = vmatprep.subr.bf16.mxu0 %v805_v28  ;;  %819 = vmatprep.subr.bf16.mxu1 %v805_v28 }
  0xd9   : > { %808 = vmatpush3.bf16.msra.mxu0 %v805_v28  ;;  %827 = vmatpush3.bf16.msra.mxu1 %v805_v28 }
  0xda   : > { %810 = vmatprep.subr.bf16.mxu0 %v809_v31  ;;  %820 = vmatprep.subr.bf16.mxu1 %v809_v31 }
  0xdd   : > { %812 = vmatpush3.bf16.msra.mxu0 %v809_v31  ;;  %828 = vmatpush3.bf16.msra.mxu1 %v809_v31 }
  0xe0   : > { %758 = vmatmul.mubr.msk.f32.vlgmr.msra.gmra.mrb[0].mxu0 %vm1571_vm2, %v283_v32  ;;  %770 = vmatmul.mubr.msk.f32.vlgmr.msra.gmra.mrb[0].mxu1 %vm1571_vm2, %v291_v33 }
  0xe1   : > { %760 = vmatprep.mubr.msk.f32.mxu0 %vm1571_vm2, %v284_v34  ;;  %772 = vmatprep.mubr.msk.f32.mxu1 %vm1571_vm2, %v292_v35 }
  0xe4   : > { %761 = vmatmul.mubr.msk.f32.gmra.mrb[2].mxu0 %vm1571_vm2, %v285_v36  ;;  %773 = vmatmul.mubr.msk.f32.gmra.mrb[2].mxu1 %vm1571_vm2, %v293_v37 }
  0xe5   : > { %763 = vmatprep.mubr.msk.f32.mxu0 %vm1571_vm2, %v286_v38  ;;  %775 = vmatprep.mubr.msk.f32.mxu1 %vm1571_vm2, %v294_v39 }
  0xe8   : > { %764 = vmatmul.mubr.msk.f32.gmra.mrb[4].mxu0 %vm1571_vm2, %v287_v40  ;;  %776 = vmatmul.mubr.msk.f32.gmra.mrb[4].mxu1 %vm1571_vm2, %v295_v41 }
  0xe9   : > { %766 = vmatprep.mubr.msk.f32.mxu0 %vm1571_vm2, %v288_v42  ;;  %778 = vmatprep.mubr.msk.f32.mxu1 %vm1571_vm2, %v296_v43 }
  0xec   : > { %767 = vmatmul.mubr.msk.f32.gmra.mrb[6].mxu0 %vm1571_vm2, %v289_v44  ;;  %779 = vmatmul.mubr.msk.f32.gmra.mrb[6].mxu1 %vm1571_vm2, %v297_v45 }
 0x1b3   : > { %v759_v50 = vpop.f32.mrb[0].mxu0  ;;  %v771_v51 = vpop.f32.mrb[0].mxu1 }
 0x1b4   : > { %v499_v52 = vadd.f32 %v759_v50, %v322_v46  ;;  %v507_v53 = vadd.f32 %v771_v51, %v330_v47  ;;  %v419_v54 = vpop.f32.mrb[1].mxu0  ;;  %v459_v55 = vpop.f32.mrb[1].mxu1 }
 0x1b5   : > { %v498_v56 = vadd.f32 %v419_v54, %v321_v48  ;;  %v506_v57 = vadd.f32 %v459_v55, %v329_v49 }
 0x1b6   : > { %515 = vst [vmem:[%s1541_s11 + $0x8] sm:$0xff] %v499_v52  ;;  %523 = vst [vmem:[%s1541_s11 + $0x48] sm:$0xff] %v507_v53 }
 0x1b7   : > { %514 = vst [vmem:[%s1541_s11] sm:$0xff] %v498_v56  ;;  %522 = vst [vmem:[%s1541_s11 + $0x40] sm:$0xff] %v506_v57  ;;  %v762_v62 = vpop.f32.mrb[2].mxu0  ;;  %v774_v63 = vpop.f32.mrb[2].mxu1 }
 0x1b8   : > { %v501_v0 = vadd.f32 %v762_v62, %v324_v58  ;;  %v509_v1 = vadd.f32 %v774_v63, %v332_v59  ;;  %v429_v2 = vpop.f32.mrb[3].mxu0  ;;  %v469_v3 = vpop.f32.mrb[3].mxu1 }
 0x1b9   : > { %v500_v4 = vadd.f32 %v429_v2, %v323_v60  ;;  %v508_v5 = vadd.f32 %v469_v3, %v331_v61 }
 0x1ba   : > { %517 = vst [vmem:[%s1541_s11 + $0x18] sm:$0xff] %v501_v0  ;;  %525 = vst [vmem:[%s1541_s11 + $0x58] sm:$0xff] %v509_v1 }
 0x1bb   : > { %516 = vst [vmem:[%s1541_s11 + $0x10] sm:$0xff] %v500_v4  ;;  %524 = vst [vmem:[%s1541_s11 + $0x50] sm:$0xff] %v508_v5  ;;  %v765_v10 = vpop.f32.mrb[4].mxu0  ;;  %v777_v11 = vpop.f32.mrb[4].mxu1 }
 0x1bc   : > { %v503_v12 = vadd.f32 %v765_v10, %v326_v6  ;;  %v511_v13 = vadd.f32 %v777_v11, %v334_v7  ;;  %v439_v14 = vpop.f32.mrb[5].mxu0  ;;  %v479_v15 = vpop.f32.mrb[5].mxu1 }
 0x1bd   : > { %v502_v16 = vadd.f32 %v439_v14, %v325_v8  ;;  %v510_v17 = vadd.f32 %v479_v15, %v333_v9 }
 0x1be   : > { %519 = vst [vmem:[%s1541_s11 + $0x28] sm:$0xff] %v503_v12  ;;  %527 = vst [vmem:[%s1541_s11 + $0x68] sm:$0xff] %v511_v13 }
 0x1bf   : > { %518 = vst [vmem:[%s1541_s11 + $0x20] sm:$0xff] %v502_v16  ;;  %526 = vst [vmem:[%s1541_s11 + $0x60] sm:$0xff] %v510_v17  ;;  %v768_v22 = vpop.f32.mrb[6].mxu0  ;;  %v780_v23 = vpop.f32.mrb[6].mxu1 }
 0x1c0   : > { %v505_v24 = vadd.f32 %v768_v22, %v328_v18  ;;  %v513_v25 = vadd.f32 %v780_v23, %v336_v19  ;;  %v449_v26 = vpop.f32.mrb[7].mxu0  ;;  %v489_v27 = vpop.f32.mrb[7].mxu1 }
 0x1c1   : > { %v504_v28 = vadd.f32 %v449_v26, %v327_v20  ;;  %v512_v29 = vadd.f32 %v489_v27, %v335_v21 }
 0x1c2   : > { %521 = vst [vmem:[%s1541_s11 + $0x38] sm:$0xff] %v505_v24  ;;  %529 = vst [vmem:[%s1541_s11 + $0x78] sm:$0xff] %v513_v25 }
 0x1c3   : > { %520 = vst [vmem:[%s1541_s11 + $0x30] sm:$0xff] %v504_v28  ;;  %528 = vst [vmem:[%s1541_s11 + $0x70] sm:$0xff] %v512_v29 }
 0x1c4   : > { %1082 = shalt.err (!%p1079_p2)
}
 0x1c5   : > { %s1083_s15 = scalar_lea.hbm %s1669_s21, 2048  ;;  %s1087_s2 = scalar_lea.hbm %s1746_s6, 8192 }
 0x1c6   : > { %p1084_p11 = scmp.ne.s32.totalorder %s1669_s21, %s1083_s15  ;;  %p1088_p5 = scmp.lt.u32.totalorder %s1669_s21, %s1746_s6 }
 0x1c7   : > { %p1089_p0 = scmp.lt.u32.totalorder %s1087_s2, %s1083_s15  ;;  %p1091_p8 = scmp.lt.u32.totalorder %s1083_s15, %s1669_s21 }
 0x1c8   : > { %p1085_p6 = pnand %p1084_p11, %p1783_p13 }
 0x1c9   : > { %p1090_p4 = por %p1089_p0, %p1088_p5 }
 0x1ca   : > { %p1086_p3 = pneg %p1085_p6 }
 0x1cb   : > { %p1092_p7 = por %p1091_p8, %p1090_p4 }
 0x1cd   : > { %p1093_p9 = pnand %p1092_p7, %p1086_p3 }
 0x1cf   : > { %1096 = shalt.err (!%p1093_p9)
}
 0x1d0   : > { %s1217_s12 = smov 128   ;;  %s1218_s14 = smov 8  }
 0x1d1   : > { %839 = dma.vmem_to_hbm [thread:$0]  (%p1783_p13), %s1671_s8, 2048, %s1669_s21, %s1679_s20, %s1217_s12, %s1217_s12, %s1218_s14  }
 0x1d2 PF: > { %p857_p12 = scmp.ge.s32.totalorder %s1205_s29, 2  ;;  %s562_s0 = sand.u32 1, %s1161_s3  }
 0x1d3   : > { %p1784_p10 = scmp.ne.s32.totalorder %s1766_s17, 0  ;;  %s563_s27 = scalar_lea.sflag [#allocation9], %s562_s0 }
 0x1d5   : > { %p853_p1 = pnand %p857_p12, %p1784_p10 }
 0x1d7   : > { %1156 = dma.done.wait (!%p853_p1), %s563_s27, 2048  }
 0x1d8   : > { %1158 = vsyncadd (!%p853_p1), %s563_s27, 4294965248  ;;  %s41_s29 = sadd.s32 1, %s1205_s29   ;;  %s1785_s30 = sld [smem:[#allocation22_spill]] }
 0x1d9   : > { %p38_p2 = scmp.ge.s32.totalorder %s41_s29, 6   ;;  %s1786_s20 = sld [smem:[#allocation26_spill]] }
 0x1da   : > { %s1787_s1 = sld [smem:[#allocation23_spill]]  ;;  %s1788_s26 = sld [smem:[#allocation25_spill]] }
 0x1db   : > { %s1789_s8 = sld [smem:[#allocation24_spill]]  ;;  %s1790_s3 = smov %s1165_s19 }
 0x1dc   : > { %s1792_s21 = smov %s1177_s22  ;;  %s1793_s22 = smov %s1181_s23 }
 0x1dd   : > { %s1794_s23 = smov %s1468_s4  ;;  %s1795_s24 = smov %s1189_s25 }
 0x1de   : > { %s1791_s19 = smov %s1785_s30  ;;  %s1797_s27 = smov %s1201_s28 }
 0x1df   :  { %40 = sbr.rel (!%p38_p2) target bundleno = 54 (0x36), region = 90 }
 0x1e0   : > { %s1796_s25 = smov %s1787_s1 }
 0x1e1   : > { %s1798_s28 = smov %s1789_s8 }
 0x1e6   :  { %568 = vsyncpa [#allocation8], 1 }
 0x1e7   :  { %570 = vsyncpa [#allocation8 + $0x1], 1 }
 0x1e8   :  { %571 = vsyncpa [#allocation11], 1 }
 0x1e9   :  { %573 = vsyncpa [#allocation11 + $0x1], 1 }
 0x1ea   :  { %574 = vsyncpa [#allocation9], 1 }
 0x1eb   :  { %576 = vsyncpa [#allocation9 + $0x1], 1 }

</bundles_post_ra>
